<compile_context>
chip_gen: v7x
topology: tpu7x:2x2x1
jax: 0.10.0
libtpu: 0.0.40
codegen_flags: <defaults>
</compile_context>

<pallas_src>
import jax
import jax.numpy as jnp
import numpy as np
from jax import lax
from jax.experimental import pallas as pl
from jax.experimental.pallas import tpu as pltpu


def _basic_block_kernel(pre_ref, whh_ref, wlin_ref, resb_ref, o_ref):
    """Single-invocation LSTM recurrence + register-resident head.

    pre_ref : (T*B, 4H)  x@Wih^T + (b_ih+b_hh), gate cols (f,i,o,g), f/i/o pre-scaled 0.5
    whh_ref : (H, 4H)    recurrent weight^T, same gate order / pre-scale
    wlin_ref: (1, H)     linear head weight row
    resb_ref: (T, B)     x[:, :, 0] + b_lin  (residual + head bias folded)
    o_ref   : (T, B)     output (reshaped to (T,B,1) in the wrapper)
    """
    T, B = resb_ref.shape
    H = whh_ref.shape[0]
    H3 = 3 * H

    whh = whh_ref[...]                                    # (H, 4H), VMEM/vreg resident
    wl = wlin_ref[...]                                    # (1, H)
    mxu_dt = whh.dtype

    h = jnp.zeros((B, H), jnp.float32)
    c = jnp.zeros((B, H), jnp.float32)
    hs = []

    # Fully-unrolled serial recurrence (T small; static slices below are free views).
    for t in range(T):
        pre = pre_ref[t * B:(t + 1) * B, :]               # (B, 4H) dense rows
        gates = pre + jnp.dot(h.astype(mxu_dt), whh,
                              preferred_element_type=jnp.float32)
        t_all = jnp.tanh(gates)                           # ONE full-width EUP push
        s = 0.5 * t_all[:, :H3] + 0.5                     # sigmoid(x) = 0.5*tanh(x/2)+0.5
        f_g = s[:, 0 * H:1 * H]                           # f at lane offset 0 -> no rotate vs c
        i_g = s[:, 1 * H:2 * H]
        o_g = s[:, 2 * H:H3]
        g_g = t_all[:, H3:]
        c = f_g * c + i_g * g_g
        h = o_g * jnp.tanh(c)
        hs.append(h)                                      # stays in registers

    # Head: y_t = h_t . w_lin, done once after the loop (off the serial chain),
    # then residual + bias and a single dense output store.
    h_all = jnp.stack(hs, axis=0)                         # (T, B, H)
    y = jnp.sum(h_all * wl, axis=-1) + resb_ref[...]      # (T, B)
    o_ref[...] = y.astype(o_ref.dtype)


def basic_block_forward(x, params, mxu_dtype=jnp.float32):
    """x: (T, B, I) float32. Returns (T, B, 1).

    mxu_dtype=jnp.bfloat16 is the v6e/v7x fast path for the recurrent matmul
    (loosen the test tolerance if used).
    """
    T, B, I = x.shape
    w_ih, w_hh, b_ih, b_hh, w_lin, b_lin = params
    H = w_hh.shape[1]

    # Reorder PyTorch gate blocks (i, f, g, o) -> (f, i, o, g):
    # f at lane offset 0 (multiplied directly with c), sigmoid gates contiguous.
    def reorder(a):
        gi, gf, gg, go = jnp.split(a, 4, axis=0)
        return jnp.concatenate([gf, gi, go, gg], axis=0)

    w_ih_r = reorder(w_ih)                                # (4H, I)
    w_hh_r = reorder(w_hh)                                # (4H, H)
    b_r = reorder(b_ih) + reorder(b_hh)                   # (4H,)

    # Fold the 0.5 pre-scale of the sigmoid (f, i, o) columns into the weights/bias
    # so the kernel needs only one full-width tanh per step.
    scale = jnp.concatenate([jnp.full((3 * H,), 0.5, jnp.float32),
                             jnp.ones((H,), jnp.float32)])
    w_ih_r = w_ih_r * scale[:, None]
    w_hh_r = w_hh_r * scale[:, None]
    b_r = b_r * scale

    # Time-parallel input projection hoisted off the serial path; flattened to a
    # lane/sublane-dense (T*B, 4H) slab.
    pre_gates = (jnp.einsum('tbi,gi->tbg', x, w_ih_r) + b_r).reshape(T * B, 4 * H)
    whh_t = w_hh_r.T.astype(mxu_dtype)                    # (H, 4H)
    resb = x[:, :, 0] + b_lin                             # (T, B) residual + head bias

    out = pl.pallas_call(
        _basic_block_kernel,
        out_shape=jax.ShapeDtypeStruct((T, B), jnp.float32),
        grid_spec=pltpu.PrefetchScalarGridSpec(
            num_scalar_prefetch=0,
            grid=(1,),                                    # single invocation: serial recurrence
            in_specs=[
                pl.BlockSpec((T * B, 4 * H), lambda i: (0, 0)),   # pre-gates, dense
                pl.BlockSpec((H, 4 * H), lambda i: (0, 0)),       # Whh^T
                pl.BlockSpec((1, H), lambda i: (0, 0)),           # w_lin row
                pl.BlockSpec((T, B), lambda i: (0, 0)),           # residual + b_lin
            ],
            out_specs=pl.BlockSpec((T, B), lambda i: (0, 0)),
        ),
        compiler_params=pltpu.CompilerParams(
            dimension_semantics=("arbitrary",)),
    )(pre_gates, whh_t, w_lin, resb)
    return out.reshape(T, B, 1)


def ref_forward(x, params):
    """Pure-JAX reference mirroring torch semantics (hidden=None -> zeros)."""
    w_ih, w_hh, b_ih, b_hh, w_lin, b_lin = params
    H = w_hh.shape[1]
    B = x.shape[1]

    def step(carry, x_t):
        h, c = carry
        gates = x_t @ w_ih.T + b_ih + h @ w_hh.T + b_hh
        i_g = jax.nn.sigmoid(gates[:, 0 * H:1 * H])
        f_g = jax.nn.sigmoid(gates[:, 1 * H:2 * H])
        g_g = jnp.tanh(gates[:, 2 * H:3 * H])
        o_g = jax.nn.sigmoid(gates[:, 3 * H:4 * H])
        c_new = f_g * c + i_g * g_g
        h_new = o_g * jnp.tanh(c_new)
        return (h_new, c_new), h_new

    h0 = jnp.zeros((B, H), jnp.float32)
    c0 = jnp.zeros((B, H), jnp.float32)
    _, hs = lax.scan(step, (h0, c0), x)                   # (T, B, H)
    return hs @ w_lin.T + b_lin + x[:, :, 0:1]            # (T, B, 1)


def init_params(key, hid_sz, input_size):
    """Deterministic PyTorch-style init: U(-1/sqrt(H), 1/sqrt(H))."""
    k = 1.0 / np.sqrt(hid_sz)
    keys = jax.random.split(key, 6)
    w_ih = jax.random.uniform(keys[0], (4 * hid_sz, input_size), jnp.float32, -k, k)
    w_hh = jax.random.uniform(keys[1], (4 * hid_sz, hid_sz), jnp.float32, -k, k)
    b_ih = jax.random.uniform(keys[2], (4 * hid_sz,), jnp.float32, -k, k)
    b_hh = jax.random.uniform(keys[3], (4 * hid_sz,), jnp.float32, -k, k)
    w_lin = jax.random.uniform(keys[4], (1, hid_sz), jnp.float32, -k, k)
    b_lin = jax.random.uniform(keys[5], (1,), jnp.float32, -k, k)
    return (w_ih, w_hh, b_ih, b_hh, w_lin, b_lin)


if __name__ == "__main__":
    T, B, I, H = 8, 2, 4, 32   # seq=8, batch=2, input_size=4, hidden=32
    key = jax.random.PRNGKey(0)
    kx, kp = jax.random.split(key)
    x = jax.random.normal(kx, (T, B, I), jnp.float32)
    params = init_params(kp, H, I)

    out = basic_block_forward(x, params)
    out = jax.block_until_ready(out)

    ref = ref_forward(x, params)
    # Slightly loosened vs 1e-5: the sigmoid-as-tanh folding changes rounding a hair.
    np.testing.assert_allclose(np.asarray(out), np.asarray(ref),
                               rtol=2e-5, atol=2e-5)
    print("KERNEL_OK")
</pallas_src>

<mosaic_0001>
module attributes {stable_mosaic.version = 11 : i64} {
  func.func @_basic_block_kernel(%arg0: i32, %arg1: memref<16x128xf32, #tpu.memory_space<vmem>>, %arg2: memref<32x128xf32, #tpu.memory_space<vmem>>, %arg3: memref<1x32xf32, #tpu.memory_space<vmem>>, %arg4: memref<8x2xf32, #tpu.memory_space<vmem>>, %arg5: memref<8x2xf32, #tpu.memory_space<vmem>>) attributes {dimension_semantics = [#tpu.dimension_semantics<arbitrary>], iteration_bounds = array<i64: 1>, scalar_prefetch = 0 : i64, scratch_operands = 0 : i64, tpu.core_type = #tpu.core_type<tc>, window_params = [{pipeline_mode = #tpu.pipeline_mode<synchronous>, transform_indices = @transform_0, window_bounds = array<i64: 16, 128>}, {pipeline_mode = #tpu.pipeline_mode<synchronous>, transform_indices = @transform_1, window_bounds = array<i64: 32, 128>}, {pipeline_mode = #tpu.pipeline_mode<synchronous>, transform_indices = @transform_2, window_bounds = array<i64: 1, 32>}, {pipeline_mode = #tpu.pipeline_mode<synchronous>, transform_indices = @transform_3, window_bounds = array<i64: 8, 2>}, {pipeline_mode = #tpu.pipeline_mode<synchronous>, transform_indices = @transform_4, window_bounds = array<i64: 8, 2>}]} {
    %c0 = arith.constant 0 : index
    %c0_0 = arith.constant 0 : index
    %0 = vector.load %arg2[%c0, %c0_0] : memref<32x128xf32, #tpu.memory_space<vmem>>, vector<32x128xf32>
    %c0_1 = arith.constant 0 : index
    %c0_2 = arith.constant 0 : index
    %1 = vector.load %arg3[%c0_1, %c0_2] : memref<1x32xf32, #tpu.memory_space<vmem>>, vector<1x32xf32>
    %cst = arith.constant 0.000000e+00 : f32
    %2 = vector.broadcast %cst : f32 to vector<2x32xf32>
    %cst_3 = arith.constant 0.000000e+00 : f32
    %3 = vector.broadcast %cst_3 : f32 to vector<2x32xf32>
    %c0_4 = arith.constant 0 : index
    %c0_5 = arith.constant 0 : index
    %4 = vector.load %arg1[%c0_4, %c0_5] : memref<16x128xf32, #tpu.memory_space<vmem>>, vector<2x128xf32>
    %cst_6 = arith.constant dense<0.000000e+00> : vector<2x128xf32>
    %5 = tpu.matmul %2, %0, %cst_6 {dimension_numbers = #tpu.dot_dimension_numbers<[1], [0], [0], [1], [0, 0, 1, 1], [], []>} : vector<2x32xf32>, vector<32x128xf32>, vector<2x128xf32> -> vector<2x128xf32>
    %6 = arith.addf %4, %5 : vector<2x128xf32>
    %7 = math.tanh %6 : vector<2x128xf32>
    %8 = vector.extract_strided_slice %7 {offsets = [0, 0], sizes = [2, 96], strides = [1, 1]} : vector<2x128xf32> to vector<2x96xf32>
    %cst_7 = arith.constant 5.000000e-01 : f32
    %9 = vector.broadcast %cst_7 : f32 to vector<2x96xf32>
    %10 = arith.mulf %9, %8 : vector<2x96xf32>
    %cst_8 = arith.constant 5.000000e-01 : f32
    %11 = vector.broadcast %cst_8 : f32 to vector<2x96xf32>
    %12 = arith.addf %10, %11 : vector<2x96xf32>
    %13 = vector.extract_strided_slice %12 {offsets = [0, 0], sizes = [2, 32], strides = [1, 1]} : vector<2x96xf32> to vector<2x32xf32>
    %14 = vector.extract_strided_slice %12 {offsets = [0, 32], sizes = [2, 32], strides = [1, 1]} : vector<2x96xf32> to vector<2x32xf32>
    %15 = vector.extract_strided_slice %12 {offsets = [0, 64], sizes = [2, 32], strides = [1, 1]} : vector<2x96xf32> to vector<2x32xf32>
    %16 = vector.extract_strided_slice %7 {offsets = [0, 96], sizes = [2, 32], strides = [1, 1]} : vector<2x128xf32> to vector<2x32xf32>
    %17 = arith.mulf %13, %3 : vector<2x32xf32>
    %18 = arith.mulf %14, %16 : vector<2x32xf32>
    %19 = arith.addf %17, %18 : vector<2x32xf32>
    %20 = math.tanh %19 : vector<2x32xf32>
    %21 = arith.mulf %15, %20 : vector<2x32xf32>
    %c2 = arith.constant 2 : index
    %c0_9 = arith.constant 0 : index
    %22 = vector.load %arg1[%c2, %c0_9] : memref<16x128xf32, #tpu.memory_space<vmem>>, vector<2x128xf32>
    %cst_10 = arith.constant dense<0.000000e+00> : vector<2x128xf32>
    %23 = tpu.matmul %21, %0, %cst_10 {dimension_numbers = #tpu.dot_dimension_numbers<[1], [0], [0], [1], [0, 0, 1, 1], [], []>} : vector<2x32xf32>, vector<32x128xf32>, vector<2x128xf32> -> vector<2x128xf32>
    %24 = arith.addf %22, %23 : vector<2x128xf32>
    %25 = math.tanh %24 : vector<2x128xf32>
    %26 = vector.extract_strided_slice %25 {offsets = [0, 0], sizes = [2, 96], strides = [1, 1]} : vector<2x128xf32> to vector<2x96xf32>
    %cst_11 = arith.constant 5.000000e-01 : f32
    %27 = vector.broadcast %cst_11 : f32 to vector<2x96xf32>
    %28 = arith.mulf %27, %26 : vector<2x96xf32>
    %cst_12 = arith.constant 5.000000e-01 : f32
    %29 = vector.broadcast %cst_12 : f32 to vector<2x96xf32>
    %30 = arith.addf %28, %29 : vector<2x96xf32>
    %31 = vector.extract_strided_slice %30 {offsets = [0, 0], sizes = [2, 32], strides = [1, 1]} : vector<2x96xf32> to vector<2x32xf32>
    %32 = vector.extract_strided_slice %30 {offsets = [0, 32], sizes = [2, 32], strides = [1, 1]} : vector<2x96xf32> to vector<2x32xf32>
    %33 = vector.extract_strided_slice %30 {offsets = [0, 64], sizes = [2, 32], strides = [1, 1]} : vector<2x96xf32> to vector<2x32xf32>
    %34 = vector.extract_strided_slice %25 {offsets = [0, 96], sizes = [2, 32], strides = [1, 1]} : vector<2x128xf32> to vector<2x32xf32>
    %35 = arith.mulf %31, %19 : vector<2x32xf32>
    %36 = arith.mulf %32, %34 : vector<2x32xf32>
    %37 = arith.addf %35, %36 : vector<2x32xf32>
    %38 = math.tanh %37 : vector<2x32xf32>
    %39 = arith.mulf %33, %38 : vector<2x32xf32>
    %c4 = arith.constant 4 : index
    %c0_13 = arith.constant 0 : index
    %40 = vector.load %arg1[%c4, %c0_13] : memref<16x128xf32, #tpu.memory_space<vmem>>, vector<2x128xf32>
    %cst_14 = arith.constant dense<0.000000e+00> : vector<2x128xf32>
    %41 = tpu.matmul %39, %0, %cst_14 {dimension_numbers = #tpu.dot_dimension_numbers<[1], [0], [0], [1], [0, 0, 1, 1], [], []>} : vector<2x32xf32>, vector<32x128xf32>, vector<2x128xf32> -> vector<2x128xf32>
    %42 = arith.addf %40, %41 : vector<2x128xf32>
    %43 = math.tanh %42 : vector<2x128xf32>
    %44 = vector.extract_strided_slice %43 {offsets = [0, 0], sizes = [2, 96], strides = [1, 1]} : vector<2x128xf32> to vector<2x96xf32>
    %cst_15 = arith.constant 5.000000e-01 : f32
    %45 = vector.broadcast %cst_15 : f32 to vector<2x96xf32>
    %46 = arith.mulf %45, %44 : vector<2x96xf32>
    %cst_16 = arith.constant 5.000000e-01 : f32
    %47 = vector.broadcast %cst_16 : f32 to vector<2x96xf32>
    %48 = arith.addf %46, %47 : vector<2x96xf32>
    %49 = vector.extract_strided_slice %48 {offsets = [0, 0], sizes = [2, 32], strides = [1, 1]} : vector<2x96xf32> to vector<2x32xf32>
    %50 = vector.extract_strided_slice %48 {offsets = [0, 32], sizes = [2, 32], strides = [1, 1]} : vector<2x96xf32> to vector<2x32xf32>
    %51 = vector.extract_strided_slice %48 {offsets = [0, 64], sizes = [2, 32], strides = [1, 1]} : vector<2x96xf32> to vector<2x32xf32>
    %52 = vector.extract_strided_slice %43 {offsets = [0, 96], sizes = [2, 32], strides = [1, 1]} : vector<2x128xf32> to vector<2x32xf32>
    %53 = arith.mulf %49, %37 : vector<2x32xf32>
    %54 = arith.mulf %50, %52 : vector<2x32xf32>
    %55 = arith.addf %53, %54 : vector<2x32xf32>
    %56 = math.tanh %55 : vector<2x32xf32>
    %57 = arith.mulf %51, %56 : vector<2x32xf32>
    %c6 = arith.constant 6 : index
    %c0_17 = arith.constant 0 : index
    %58 = vector.load %arg1[%c6, %c0_17] : memref<16x128xf32, #tpu.memory_space<vmem>>, vector<2x128xf32>
    %cst_18 = arith.constant dense<0.000000e+00> : vector<2x128xf32>
    %59 = tpu.matmul %57, %0, %cst_18 {dimension_numbers = #tpu.dot_dimension_numbers<[1], [0], [0], [1], [0, 0, 1, 1], [], []>} : vector<2x32xf32>, vector<32x128xf32>, vector<2x128xf32> -> vector<2x128xf32>
    %60 = arith.addf %58, %59 : vector<2x128xf32>
    %61 = math.tanh %60 : vector<2x128xf32>
    %62 = vector.extract_strided_slice %61 {offsets = [0, 0], sizes = [2, 96], strides = [1, 1]} : vector<2x128xf32> to vector<2x96xf32>
    %cst_19 = arith.constant 5.000000e-01 : f32
    %63 = vector.broadcast %cst_19 : f32 to vector<2x96xf32>
    %64 = arith.mulf %63, %62 : vector<2x96xf32>
    %cst_20 = arith.constant 5.000000e-01 : f32
    %65 = vector.broadcast %cst_20 : f32 to vector<2x96xf32>
    %66 = arith.addf %64, %65 : vector<2x96xf32>
    %67 = vector.extract_strided_slice %66 {offsets = [0, 0], sizes = [2, 32], strides = [1, 1]} : vector<2x96xf32> to vector<2x32xf32>
    %68 = vector.extract_strided_slice %66 {offsets = [0, 32], sizes = [2, 32], strides = [1, 1]} : vector<2x96xf32> to vector<2x32xf32>
    %69 = vector.extract_strided_slice %66 {offsets = [0, 64], sizes = [2, 32], strides = [1, 1]} : vector<2x96xf32> to vector<2x32xf32>
    %70 = vector.extract_strided_slice %61 {offsets = [0, 96], sizes = [2, 32], strides = [1, 1]} : vector<2x128xf32> to vector<2x32xf32>
    %71 = arith.mulf %67, %55 : vector<2x32xf32>
    %72 = arith.mulf %68, %70 : vector<2x32xf32>
    %73 = arith.addf %71, %72 : vector<2x32xf32>
    %74 = math.tanh %73 : vector<2x32xf32>
    %75 = arith.mulf %69, %74 : vector<2x32xf32>
    %c8 = arith.constant 8 : index
    %c0_21 = arith.constant 0 : index
    %76 = vector.load %arg1[%c8, %c0_21] : memref<16x128xf32, #tpu.memory_space<vmem>>, vector<2x128xf32>
    %cst_22 = arith.constant dense<0.000000e+00> : vector<2x128xf32>
    %77 = tpu.matmul %75, %0, %cst_22 {dimension_numbers = #tpu.dot_dimension_numbers<[1], [0], [0], [1], [0, 0, 1, 1], [], []>} : vector<2x32xf32>, vector<32x128xf32>, vector<2x128xf32> -> vector<2x128xf32>
    %78 = arith.addf %76, %77 : vector<2x128xf32>
    %79 = math.tanh %78 : vector<2x128xf32>
    %80 = vector.extract_strided_slice %79 {offsets = [0, 0], sizes = [2, 96], strides = [1, 1]} : vector<2x128xf32> to vector<2x96xf32>
    %cst_23 = arith.constant 5.000000e-01 : f32
    %81 = vector.broadcast %cst_23 : f32 to vector<2x96xf32>
    %82 = arith.mulf %81, %80 : vector<2x96xf32>
    %cst_24 = arith.constant 5.000000e-01 : f32
    %83 = vector.broadcast %cst_24 : f32 to vector<2x96xf32>
    %84 = arith.addf %82, %83 : vector<2x96xf32>
    %85 = vector.extract_strided_slice %84 {offsets = [0, 0], sizes = [2, 32], strides = [1, 1]} : vector<2x96xf32> to vector<2x32xf32>
    %86 = vector.extract_strided_slice %84 {offsets = [0, 32], sizes = [2, 32], strides = [1, 1]} : vector<2x96xf32> to vector<2x32xf32>
    %87 = vector.extract_strided_slice %84 {offsets = [0, 64], sizes = [2, 32], strides = [1, 1]} : vector<2x96xf32> to vector<2x32xf32>
    %88 = vector.extract_strided_slice %79 {offsets = [0, 96], sizes = [2, 32], strides = [1, 1]} : vector<2x128xf32> to vector<2x32xf32>
    %89 = arith.mulf %85, %73 : vector<2x32xf32>
    %90 = arith.mulf %86, %88 : vector<2x32xf32>
    %91 = arith.addf %89, %90 : vector<2x32xf32>
    %92 = math.tanh %91 : vector<2x32xf32>
    %93 = arith.mulf %87, %92 : vector<2x32xf32>
    %c10 = arith.constant 10 : index
    %c0_25 = arith.constant 0 : index
    %94 = vector.load %arg1[%c10, %c0_25] : memref<16x128xf32, #tpu.memory_space<vmem>>, vector<2x128xf32>
    %cst_26 = arith.constant dense<0.000000e+00> : vector<2x128xf32>
    %95 = tpu.matmul %93, %0, %cst_26 {dimension_numbers = #tpu.dot_dimension_numbers<[1], [0], [0], [1], [0, 0, 1, 1], [], []>} : vector<2x32xf32>, vector<32x128xf32>, vector<2x128xf32> -> vector<2x128xf32>
    %96 = arith.addf %94, %95 : vector<2x128xf32>
    %97 = math.tanh %96 : vector<2x128xf32>
    %98 = vector.extract_strided_slice %97 {offsets = [0, 0], sizes = [2, 96], strides = [1, 1]} : vector<2x128xf32> to vector<2x96xf32>
    %cst_27 = arith.constant 5.000000e-01 : f32
    %99 = vector.broadcast %cst_27 : f32 to vector<2x96xf32>
    %100 = arith.mulf %99, %98 : vector<2x96xf32>
    %cst_28 = arith.constant 5.000000e-01 : f32
    %101 = vector.broadcast %cst_28 : f32 to vector<2x96xf32>
    %102 = arith.addf %100, %101 : vector<2x96xf32>
    %103 = vector.extract_strided_slice %102 {offsets = [0, 0], sizes = [2, 32], strides = [1, 1]} : vector<2x96xf32> to vector<2x32xf32>
    %104 = vector.extract_strided_slice %102 {offsets = [0, 32], sizes = [2, 32], strides = [1, 1]} : vector<2x96xf32> to vector<2x32xf32>
    %105 = vector.extract_strided_slice %102 {offsets = [0, 64], sizes = [2, 32], strides = [1, 1]} : vector<2x96xf32> to vector<2x32xf32>
    %106 = vector.extract_strided_slice %97 {offsets = [0, 96], sizes = [2, 32], strides = [1, 1]} : vector<2x128xf32> to vector<2x32xf32>
    %107 = arith.mulf %103, %91 : vector<2x32xf32>
    %108 = arith.mulf %104, %106 : vector<2x32xf32>
    %109 = arith.addf %107, %108 : vector<2x32xf32>
    %110 = math.tanh %109 : vector<2x32xf32>
    %111 = arith.mulf %105, %110 : vector<2x32xf32>
    %c12 = arith.constant 12 : index
    %c0_29 = arith.constant 0 : index
    %112 = vector.load %arg1[%c12, %c0_29] : memref<16x128xf32, #tpu.memory_space<vmem>>, vector<2x128xf32>
    %cst_30 = arith.constant dense<0.000000e+00> : vector<2x128xf32>
    %113 = tpu.matmul %111, %0, %cst_30 {dimension_numbers = #tpu.dot_dimension_numbers<[1], [0], [0], [1], [0, 0, 1, 1], [], []>} : vector<2x32xf32>, vector<32x128xf32>, vector<2x128xf32> -> vector<2x128xf32>
    %114 = arith.addf %112, %113 : vector<2x128xf32>
    %115 = math.tanh %114 : vector<2x128xf32>
    %116 = vector.extract_strided_slice %115 {offsets = [0, 0], sizes = [2, 96], strides = [1, 1]} : vector<2x128xf32> to vector<2x96xf32>
    %cst_31 = arith.constant 5.000000e-01 : f32
    %117 = vector.broadcast %cst_31 : f32 to vector<2x96xf32>
    %118 = arith.mulf %117, %116 : vector<2x96xf32>
    %cst_32 = arith.constant 5.000000e-01 : f32
    %119 = vector.broadcast %cst_32 : f32 to vector<2x96xf32>
    %120 = arith.addf %118, %119 : vector<2x96xf32>
    %121 = vector.extract_strided_slice %120 {offsets = [0, 0], sizes = [2, 32], strides = [1, 1]} : vector<2x96xf32> to vector<2x32xf32>
    %122 = vector.extract_strided_slice %120 {offsets = [0, 32], sizes = [2, 32], strides = [1, 1]} : vector<2x96xf32> to vector<2x32xf32>
    %123 = vector.extract_strided_slice %120 {offsets = [0, 64], sizes = [2, 32], strides = [1, 1]} : vector<2x96xf32> to vector<2x32xf32>
    %124 = vector.extract_strided_slice %115 {offsets = [0, 96], sizes = [2, 32], strides = [1, 1]} : vector<2x128xf32> to vector<2x32xf32>
    %125 = arith.mulf %121, %109 : vector<2x32xf32>
    %126 = arith.mulf %122, %124 : vector<2x32xf32>
    %127 = arith.addf %125, %126 : vector<2x32xf32>
    %128 = math.tanh %127 : vector<2x32xf32>
    %129 = arith.mulf %123, %128 : vector<2x32xf32>
    %c14 = arith.constant 14 : index
    %c0_33 = arith.constant 0 : index
    %130 = vector.load %arg1[%c14, %c0_33] : memref<16x128xf32, #tpu.memory_space<vmem>>, vector<2x128xf32>
    %cst_34 = arith.constant dense<0.000000e+00> : vector<2x128xf32>
    %131 = tpu.matmul %129, %0, %cst_34 {dimension_numbers = #tpu.dot_dimension_numbers<[1], [0], [0], [1], [0, 0, 1, 1], [], []>} : vector<2x32xf32>, vector<32x128xf32>, vector<2x128xf32> -> vector<2x128xf32>
    %132 = arith.addf %130, %131 : vector<2x128xf32>
    %133 = math.tanh %132 : vector<2x128xf32>
    %134 = vector.extract_strided_slice %133 {offsets = [0, 0], sizes = [2, 96], strides = [1, 1]} : vector<2x128xf32> to vector<2x96xf32>
    %cst_35 = arith.constant 5.000000e-01 : f32
    %135 = vector.broadcast %cst_35 : f32 to vector<2x96xf32>
    %136 = arith.mulf %135, %134 : vector<2x96xf32>
    %cst_36 = arith.constant 5.000000e-01 : f32
    %137 = vector.broadcast %cst_36 : f32 to vector<2x96xf32>
    %138 = arith.addf %136, %137 : vector<2x96xf32>
    %139 = vector.extract_strided_slice %138 {offsets = [0, 0], sizes = [2, 32], strides = [1, 1]} : vector<2x96xf32> to vector<2x32xf32>
    %140 = vector.extract_strided_slice %138 {offsets = [0, 32], sizes = [2, 32], strides = [1, 1]} : vector<2x96xf32> to vector<2x32xf32>
    %141 = vector.extract_strided_slice %138 {offsets = [0, 64], sizes = [2, 32], strides = [1, 1]} : vector<2x96xf32> to vector<2x32xf32>
    %142 = vector.extract_strided_slice %133 {offsets = [0, 96], sizes = [2, 32], strides = [1, 1]} : vector<2x128xf32> to vector<2x32xf32>
    %143 = arith.mulf %139, %127 : vector<2x32xf32>
    %144 = arith.mulf %140, %142 : vector<2x32xf32>
    %145 = arith.addf %143, %144 : vector<2x32xf32>
    %146 = math.tanh %145 : vector<2x32xf32>
    %147 = arith.mulf %141, %146 : vector<2x32xf32>
    %148 = vector.shape_cast %21 : vector<2x32xf32> to vector<1x2x32xf32>
    %149 = vector.shape_cast %39 : vector<2x32xf32> to vector<1x2x32xf32>
    %150 = vector.shape_cast %57 : vector<2x32xf32> to vector<1x2x32xf32>
    %151 = vector.shape_cast %75 : vector<2x32xf32> to vector<1x2x32xf32>
    %152 = vector.shape_cast %93 : vector<2x32xf32> to vector<1x2x32xf32>
    %153 = vector.shape_cast %111 : vector<2x32xf32> to vector<1x2x32xf32>
    %154 = vector.shape_cast %129 : vector<2x32xf32> to vector<1x2x32xf32>
    %155 = vector.shape_cast %147 : vector<2x32xf32> to vector<1x2x32xf32>
    %156 = tpu.concatenate %148, %149, %150, %151, %152, %153, %154, %155 in 0 : vector<1x2x32xf32>, vector<1x2x32xf32>, vector<1x2x32xf32>, vector<1x2x32xf32>, vector<1x2x32xf32>, vector<1x2x32xf32>, vector<1x2x32xf32>, vector<1x2x32xf32> -> vector<8x2x32xf32>
    %157 = vector.shape_cast %1 : vector<1x32xf32> to vector<1x1x32xf32>
    %158 = vector.broadcast %157 : vector<1x1x32xf32> to vector<8x2x32xf32>
    %159 = arith.mulf %156, %158 : vector<8x2x32xf32>
    %cst_37 = arith.constant dense<0.000000e+00> : vector<8x2xf32>
    %160 = vector.multi_reduction <add>, %159, %cst_37 [2] : vector<8x2x32xf32> to vector<8x2xf32>
    %c0_38 = arith.constant 0 : index
    %c0_39 = arith.constant 0 : index
    %161 = vector.load %arg4[%c0_38, %c0_39] : memref<8x2xf32, #tpu.memory_space<vmem>>, vector<8x2xf32>
    %162 = arith.addf %160, %161 : vector<8x2xf32>
    %c0_40 = arith.constant 0 : index
    %c0_41 = arith.constant 0 : index
    %163 = vector.load %arg5[%c0_40, %c0_41] : memref<8x2xf32, #tpu.memory_space<vmem>>, vector<8x2xf32>
    tpu.vector_store %arg5[%c0_40, %c0_41], %162 {strides = array<i32>} : memref<8x2xf32, #tpu.memory_space<vmem>>, vector<8x2xf32>,
    return
  }
  func.func @transform_0(%arg0: i32) -> (i32, i32) {
    %c0_i32 = arith.constant 0 : i32
    %c0_i32_0 = arith.constant 0 : i32
    %c0_i32_1 = arith.constant 0 : i32
    return %c0_i32, %c0_i32_0 : i32, i32
  }
  func.func @transform_1(%arg0: i32) -> (i32, i32) {
    %c0_i32 = arith.constant 0 : i32
    %c0_i32_0 = arith.constant 0 : i32
    %c0_i32_1 = arith.constant 0 : i32
    return %c0_i32, %c0_i32_0 : i32, i32
  }
  func.func @transform_2(%arg0: i32) -> (i32, i32) {
    %c0_i32 = arith.constant 0 : i32
    %c0_i32_0 = arith.constant 0 : i32
    %c0_i32_1 = arith.constant 0 : i32
    return %c0_i32, %c0_i32_0 : i32, i32
  }
  func.func @transform_3(%arg0: i32) -> (i32, i32) {
    %c0_i32 = arith.constant 0 : i32
    %c0_i32_0 = arith.constant 0 : i32
    %c0_i32_1 = arith.constant 0 : i32
    return %c0_i32, %c0_i32_0 : i32, i32
  }
  func.func @transform_4(%arg0: i32) -> (i32, i32) {
    %c0_i32 = arith.constant 0 : i32
    %c0_i32_0 = arith.constant 0 : i32
    %c0_i32_1 = arith.constant 0 : i32
    return %c0_i32, %c0_i32_0 : i32, i32
  }
}

</mosaic_0001>

<bundles_post_ra>
// kernel: tpu_custom_call.1
= control target key start
LH: loop header
LB: loop body
LE: loop exit
PB: predicated region body
PF: predicated region fallthrough
CT: control target
= control target key end

     0   :  { %9 = vsyncpa [#allocation3], 0  ;;  %s1550_s0 = inlined_call_operand.hbm [shape: f32[16,128], index: 0, kind: input, shape index: {}]   ;;  %s1551_s1 = inlined_call_operand.hbm [shape: f32[32,128], index: 1, kind: input, shape index: {}]   ;;  %s1552_s2 = inlined_call_operand.vmem [shape: f32[1,32], index: 2, kind: input, shape index: {}]   ;;  %s1553_s3 = inlined_call_operand.vmem [shape: f32[8,2], index: 3, kind: input, shape index: {}]   ;;  %s1554_s4 = inlined_call_operand.vmem [shape: f32[8,2], index: 4, kind: output, shape index: {}]  }
   0x1   :  { %10 = vsyncpa [#allocation5], 0  ;;  %s1337_s15 = smov [#allocation2]   ;;  %s1289_s19 = scalar_lea.hbm %s1550_s0, 256 }
   0x2   :  { %s16_s16 = sshll.u32 %s1337_s15, 4  ;;  %p1290_p0 = scmp.ne.s32.totalorder %s1550_s0, %s1289_s19  ;;  %s17_s16 = int_to_ptr.vmem [resolvable:$true] %s16_s16 }
   0x3   :  { %p1293_p1 = scmp.lt.u32.totalorder %s1289_s19, %s1550_s0 }
   0x5   :  { %p1295_p2 = pnand %p1293_p1, %p1290_p0 }
   0x7   :  { %1298 = shalt.err (!%p1295_p2)
}
   0x8   :  { %s1299_s24 = scalar_lea.vmem %s17_s16, 256  ;;  %p1304_p4 = scmp.lt.s32.totalorder %s17_s16, %s17_s16 }
   0x9   :  { %p1300_p3 = scmp.ne.s32.totalorder %s17_s16, %s1299_s24  ;;  %p1305_p5 = scmp.lt.s32.totalorder %s1299_s24, %s1299_s24 }
   0xb   :  { %p1306_p6 = por %p1305_p5, %p1304_p4 }
   0xd   :  { %p1307_p7 = pnand %p1306_p6, %p1300_p3 }
   0xf   :  { %1310 = shalt.err (!%p1307_p7)
}
  0x10   :  { %s1338_s25 = smov 128   ;;  %s1339_s26 = smov 8  }
  0x11   :  { %22 = dma.hbm_to_vmem [thread:$0]  %s1550_s0, 256, %s17_s16, [#allocation3], %s1338_s25, %s1338_s25, %s1339_s26  }
  0x12   :  { %s1340_s29 = smov [#allocation4]   ;;  %s1311_s7 = scalar_lea.hbm %s1551_s1, 512 }
  0x13   :  { %s28_s30 = sshll.u32 %s1340_s29, 4  ;;  %p1312_p8 = scmp.ne.s32.totalorder %s1551_s1, %s1311_s7  ;;  %s29_s30 = int_to_ptr.vmem [resolvable:$true] %s28_s30 }
  0x14   :  { %p1315_p9 = scmp.lt.u32.totalorder %s1311_s7, %s1551_s1 }
  0x16   :  { %p1317_p10 = pnand %p1315_p9, %p1312_p8 }
  0x18   :  { %1320 = shalt.err (!%p1317_p10)
}
  0x19   :  { %s1321_s12 = scalar_lea.vmem %s29_s30, 512  ;;  %p1326_p12 = scmp.lt.s32.totalorder %s29_s30, %s29_s30 }
  0x1a   :  { %p1322_p11 = scmp.ne.s32.totalorder %s29_s30, %s1321_s12  ;;  %p1327_p13 = scmp.lt.s32.totalorder %s1321_s12, %s1321_s12 }
  0x1c   :  { %p1328_p0 = por %p1327_p13, %p1326_p12 }
  0x1e   :  { %p1329_p1 = pnand %p1328_p0, %p1322_p11 }
  0x20   :  { %1332 = shalt.err (!%p1329_p1)
}
  0x21   :  { %34 = dma.hbm_to_vmem [thread:$0]  %s1551_s1, 512, %s29_s30, [#allocation5], %s1338_s25, %s1338_s25, %s1339_s26  }
  0x22   :  { %1333 = dma.done.wait [#allocation3], 256  }
  0x23   :  { %1334 = vsyncadd [#allocation3], 4294967040 }
  0x24   :  { %1335 = dma.done.wait [#allocation5], 512  }
  0x25   :  { %1336 = vsyncadd [#allocation5], 4294966784  ;;  %v1341_v0 = vmov 0.0|0.0   ;;  %vm1342_vm0 = vmmov 0   ;;  %v1343_v1 = vmov 0.0   ;;  %v45_v2 = vld [vmem:[#allocation4] sm:$0xff] }
  0x26   :  { %1197 = vmatprep.subr.bf16.mxu0 %v1341_v0  ;;  %1117 = vmatprep.mubr.msk.f32.mxu0 %vm1342_vm0, %v1343_v1  ;;  %v46_v3 = vld [vmem:[#allocation4 + $0x8] sm:$0xff]  ;;  %v47_v4 = vld [vmem:[#allocation4 + $0x10] sm:$0xff]  ;;  %v48_v6 = vld [vmem:[#allocation4 + $0x18] sm:$0xff]  ;;  %s1344_s1 = smov 64   ;;  %s1345_s14 = smov 96   ;;  %vm51_vm1 = vcmask 261120  }
  0x27   :  { %1203 = vmatprep.subr.bf16.mxu1 %v1341_v0  ;;  %1128 = vmatprep.mubr.msk.f32.mxu1 %vm1342_vm0, %v1343_v1  ;;  %v1402_v5 = vpack.c.bf16 %v46_v3, %v45_v2  ;;  %v1405_v7 = vpack.c.bf16 %v48_v6, %v47_v4  ;;  %v50_v8 = vld [vmem:[#allocation2] sm:$0x3]  ;;  %v146_v24 = vld [vmem:[#allocation2 + $0x2] sm:$0x3]  ;;  %v243_v40 = vld [vmem:[#allocation2 + $0x4] sm:$0x3] }
  0x28   :  { %v340_v56 = vld [vmem:[#allocation2 + $0x6] sm:$0x3]  ;;  %vm873_vm2 = vcmask 254976   ;;  %vm1038_vm3 = vcmask 1041409   ;;  %vm1040_vm4 = vcmask 1042434   ;;  %vm1042_vm5 = vcmask 1043459  }
  0x29   :  { %1199 = vmatpush3.bf16.msra.mxu0 %v1402_v5  ;;  %1205 = vmatpush3.bf16.msra.mxu1 %v1402_v5  ;;  %vm1044_vm6 = vcmask 1044484   ;;  %vm1046_vm7 = vcmask 1045509   ;;  %vm1048_vm8 = vcmask 1046534   ;;  %vm1050_vm9 = vcmask 1047559  }
  0x2a   :  { %1200 = vmatprep.subr.bf16.mxu0 %v1341_v0  ;;  %1206 = vmatprep.subr.bf16.mxu1 %v1341_v0  ;;  %vm1053_vm10 = vcmask 15360  }
  0x2d   :  { %1202 = vmatpush3.bf16.msra.mxu0 %v1405_v7  ;;  %1208 = vmatpush3.bf16.msra.mxu1 %v1405_v7 }
  0x2e   :  { %1209 = vmatprep.subr.bf16.mxu0 %v1341_v0  ;;  %1215 = vmatprep.subr.bf16.mxu1 %v1341_v0 }
  0x30   :  { %1118 = vmatmul.mubr.f32.vlgmr.msra.gmra.mrb[0].mxu0 %v1343_v1 }
  0x31   :  { %1211 = vmatpush3.bf16.msra.mxu0 %v1402_v5  ;;  %1139 = vmatprep.mubr.msk.f32.mxu0 %vm1342_vm0, %v1343_v1 }
  0x32   :  { %1212 = vmatprep.subr.bf16.mxu0 %v1341_v0 }
  0x35   :  { %1214 = vmatpush3.bf16.msra.mxu0 %v1405_v7 }
  0x36   :  { %1221 = vmatprep.subr.bf16.mxu0 %v1341_v0 }
 0x103   :  { %v121_v9 = vpop.f32.mrb[0].mxu0 }
 0x104   :  { %v125_v10 = vadd.f32 %v121_v9, %v50_v8  ;;  %v1119_v11 = vpop.f32.mrb[1].mxu0 }
 0x106   :  { %1257 = vtanh.f32 %v125_v10 }
 0x110   :  { %v1258_v12 = vpop.eup %1257 }
 0x111   :  { %131 = vrot.lane.b32.xlu0 %v1258_v12, %s1344_s1  ;;  %v127_v13 = vmul.f32 0.5, %v1258_v12  ;;  %v437_v12 = vld [vmem:[#allocation2 + $0x8] sm:$0x3] }
 0x113   :  { %v128_v14 = vadd.f32 0.5, %v127_v13 }
 0x115   :  { %v129_v17 = vmul.f32 0.0, %v128_v14 }
 0x183   :  { %v132_v15 = vpop.permute.xlu0 %131 }
 0x184   :  { %v134_v16 = vmul.f32 %v132_v15, %v128_v14 }
 0x186   :  { %136 = vrot.lane.b32.xlu0 %v134_v16, %s1345_s14 }
 0x1f8   :  { %v137_v18 = vpop.permute.xlu0 %136 }
 0x1f9   :  { %v139_v19 = vadd.f32 %v137_v18, %v129_v17 }
 0x1fb   :  { %1259 = vtanh.f32 %v139_v19 }
 0x205   :  { %v1260_v20 = vpop.eup %1259 }
 0x206   :  { %142 = vrot.lane.b32.xlu1 %v1260_v20, %s1344_s1 }
 0x278   :  { %v143_v21 = vpop.permute.xlu1 %142 }
 0x279   :  { %v1424_v22 = vmul.f32 %v143_v21, %v128_v14 }
 0x27b   :  { %148 = vrot.lane.b32.xlu1 %v1424_v22, %s1344_s1 }
 0x2ed   :  { %v149_v23 = vpop.permute.xlu1 %148 }
 0x2ee   :  { %1129 = vmatmul.mubr.msk.f32.vlgmr.msra.gmra.mrb[0].mxu1 %vm51_vm1, %v149_v23 }
 0x2ef   :  { %1217 = vmatpush3.bf16.msra.mxu1 %v1402_v5  ;;  %1150 = vmatprep.mubr.msk.f32.mxu1 %vm1342_vm0, %v1343_v1 }
 0x2f0   :  { %1218 = vmatprep.subr.bf16.mxu1 %v1341_v0 }
 0x2f3   :  { %1220 = vmatpush3.bf16.msra.mxu1 %v1405_v7 }
 0x2f4   :  { %1227 = vmatprep.subr.bf16.mxu1 %v1341_v0 }
 0x3c1   :  { %v218_v25 = vpop.f32.mrb[0].mxu1 }
 0x3c2   :  { %v222_v26 = vadd.f32 %v218_v25, %v146_v24  ;;  %v1130_v27 = vpop.f32.mrb[1].mxu1 }
 0x3c4   :  { %1261 = vtanh.f32 %v222_v26 }
 0x3ce   :  { %v1262_v28 = vpop.eup %1261 }
 0x3cf   :  { %228 = vrot.lane.b32.xlu0 %v1262_v28, %s1344_s1  ;;  %v224_v29 = vmul.f32 0.5, %v1262_v28 }
 0x3d1   :  { %v225_v30 = vadd.f32 0.5, %v224_v29  ;;  %v534_v29 = vld [vmem:[#allocation2 + $0xa] sm:$0x3] }
 0x3d3   :  { %v226_v33 = vmul.f32 %v225_v30, %v139_v19 }
 0x441   :  { %v229_v31 = vpop.permute.xlu0 %228 }
 0x442   :  { %v231_v32 = vmul.f32 %v229_v31, %v225_v30 }
 0x444   :  { %233 = vrot.lane.b32.xlu1 %v231_v32, %s1345_s14 }
 0x4b6   :  { %v234_v34 = vpop.permute.xlu1 %233 }
 0x4b7   :  { %v236_v35 = vadd.f32 %v234_v34, %v226_v33 }
 0x4b9   :  { %1263 = vtanh.f32 %v236_v35 }
 0x4c3   :  { %v1264_v36 = vpop.eup %1263 }
 0x4c4   :  { %239 = vrot.lane.b32.xlu0 %v1264_v36, %s1344_s1 }
 0x536   :  { %v240_v37 = vpop.permute.xlu0 %239 }
 0x537   :  { %v1438_v38 = vmul.f32 %v240_v37, %v225_v30 }
 0x539   :  { %245 = vrot.lane.b32.xlu1 %v1438_v38, %s1344_s1 }
 0x5ab   :  { %v246_v39 = vpop.permute.xlu1 %245 }
 0x5ac   :  { %1140 = vmatmul.mubr.msk.f32.vlgmr.msra.gmra.mrb[2].mxu0 %vm51_vm1, %v246_v39 }
 0x5ad   :  { %1223 = vmatpush3.bf16.msra.mxu0 %v1402_v5  ;;  %1161 = vmatprep.mubr.msk.f32.mxu0 %vm1342_vm0, %v1343_v1 }
 0x5ae   :  { %1224 = vmatprep.subr.bf16.mxu0 %v1341_v0 }
 0x5b1   :  { %1226 = vmatpush3.bf16.msra.mxu0 %v1405_v7 }
 0x5b2   :  { %1233 = vmatprep.subr.bf16.mxu0 %v1341_v0 }
 0x67f   :  { %v315_v41 = vpop.f32.mrb[2].mxu0 }
 0x680   :  { %v319_v42 = vadd.f32 %v315_v41, %v243_v40  ;;  %v1141_v43 = vpop.f32.mrb[3].mxu0 }
 0x682   :  { %1265 = vtanh.f32 %v319_v42  ;;  %v631_v42 = vld [vmem:[#allocation2 + $0xc] sm:$0x3] }
 0x68c   :  { %v1266_v44 = vpop.eup %1265 }
 0x68d   :  { %325 = vrot.lane.b32.xlu0 %v1266_v44, %s1344_s1  ;;  %v321_v45 = vmul.f32 0.5, %v1266_v44 }
 0x68f   :  { %v322_v46 = vadd.f32 0.5, %v321_v45 }
 0x691   :  { %v323_v49 = vmul.f32 %v322_v46, %v236_v35 }
 0x6ff   :  { %v326_v47 = vpop.permute.xlu0 %325 }
 0x700   :  { %v328_v48 = vmul.f32 %v326_v47, %v322_v46 }
 0x702   :  { %330 = vrot.lane.b32.xlu1 %v328_v48, %s1345_s14 }
 0x774   :  { %v331_v50 = vpop.permute.xlu1 %330 }
 0x775   :  { %v333_v51 = vadd.f32 %v331_v50, %v323_v49 }
 0x777   :  { %1267 = vtanh.f32 %v333_v51 }
 0x781   :  { %v1268_v52 = vpop.eup %1267 }
 0x782   :  { %336 = vrot.lane.b32.xlu0 %v1268_v52, %s1344_s1 }
 0x7f4   :  { %v337_v53 = vpop.permute.xlu0 %336 }
 0x7f5   :  { %v1452_v54 = vmul.f32 %v337_v53, %v322_v46 }
 0x7f7   :  { %342 = vrot.lane.b32.xlu1 %v1452_v54, %s1344_s1 }
 0x869   :  { %v343_v55 = vpop.permute.xlu1 %342 }
 0x86a   :  { %1151 = vmatmul.mubr.msk.f32.vlgmr.msra.gmra.mrb[2].mxu1 %vm51_vm1, %v343_v55 }
 0x86b   :  { %1229 = vmatpush3.bf16.msra.mxu1 %v1402_v5  ;;  %1172 = vmatprep.mubr.msk.f32.mxu1 %vm1342_vm0, %v1343_v1 }
 0x86c   :  { %1230 = vmatprep.subr.bf16.mxu1 %v1341_v0 }
 0x86f   :  { %1232 = vmatpush3.bf16.msra.mxu1 %v1405_v7 }
 0x870   :  { %1239 = vmatprep.subr.bf16.mxu1 %v1341_v0 }
 0x93d   :  { %v412_v57 = vpop.f32.mrb[2].mxu1 }
 0x93e   :  { %v416_v58 = vadd.f32 %v412_v57, %v340_v56  ;;  %v1152_v59 = vpop.f32.mrb[3].mxu1 }
 0x93f   :  { %v728_v59 = vld [vmem:[#allocation2 + $0xe] sm:$0x3] }
 0x940   :  { %1269 = vtanh.f32 %v416_v58 }
 0x94a   :  { %v1270_v60 = vpop.eup %1269 }
 0x94b   :  { %422 = vrot.lane.b32.xlu0 %v1270_v60, %s1344_s1  ;;  %v418_v61 = vmul.f32 0.5, %v1270_v60 }
 0x94d   :  { %v419_v62 = vadd.f32 0.5, %v418_v61 }
 0x94f   :  { %v420_v3 = vmul.f32 %v419_v62, %v333_v51 }
 0x9bd   :  { %v423_v63 = vpop.permute.xlu0 %422 }
 0x9be   :  { %v425_v2 = vmul.f32 %v423_v63, %v419_v62 }
 0x9c0   :  { %427 = vrot.lane.b32.xlu1 %v425_v2, %s1345_s14  ;;  %v1068_v2 = vld [vmem:[%s1552_s2] ss:$0 sm:$0xff] }
 0xa32   :  { %v428_v4 = vpop.permute.xlu1 %427 }
 0xa33   :  { %v430_v6 = vadd.f32 %v428_v4, %v420_v3 }
 0xa35   :  { %1271 = vtanh.f32 %v430_v6 }
 0xa3f   :  { %v1272_v8 = vpop.eup %1271 }
 0xa40   :  { %433 = vrot.lane.b32.xlu0 %v1272_v8, %s1344_s1 }
 0xab2   :  { %v434_v9 = vpop.permute.xlu0 %433 }
 0xab3   :  { %v1466_v10 = vmul.f32 %v434_v9, %v419_v62 }
 0xab5   :  { %439 = vrot.lane.b32.xlu1 %v1466_v10, %s1344_s1 }
 0xb27   :  { %v440_v11 = vpop.permute.xlu1 %439 }
 0xb28   :  { %1162 = vmatmul.mubr.msk.f32.vlgmr.msra.gmra.mrb[4].mxu0 %vm51_vm1, %v440_v11 }
 0xb29   :  { %1235 = vmatpush3.bf16.msra.mxu0 %v1402_v5  ;;  %1183 = vmatprep.mubr.msk.f32.mxu0 %vm1342_vm0, %v1343_v1 }
 0xb2a   :  { %1236 = vmatprep.subr.bf16.mxu0 %v1341_v0 }
 0xb2d   :  { %1238 = vmatpush3.bf16.msra.mxu0 %v1405_v7 }
 0xbfb   :  { %v509_v13 = vpop.f32.mrb[4].mxu0 }
 0xbfc   :  { %v513_v14 = vadd.f32 %v509_v13, %v437_v12  ;;  %v1163_v15 = vpop.f32.mrb[5].mxu0 }
 0xbfe   :  { %1273 = vtanh.f32 %v513_v14 }
 0xc08   :  { %v1274_v16 = vpop.eup %1273 }
 0xc09   :  { %519 = vrot.lane.b32.xlu0 %v1274_v16, %s1344_s1  ;;  %v515_v17 = vmul.f32 0.5, %v1274_v16 }
 0xc0b   :  { %v516_v18 = vadd.f32 0.5, %v515_v17 }
 0xc0d   :  { %v517_v21 = vmul.f32 %v516_v18, %v430_v6 }
 0xc7b   :  { %v520_v19 = vpop.permute.xlu0 %519 }
 0xc7c   :  { %v522_v20 = vmul.f32 %v520_v19, %v516_v18 }
 0xc7e   :  { %524 = vrot.lane.b32.xlu1 %v522_v20, %s1345_s14 }
 0xcf0   :  { %v525_v23 = vpop.permute.xlu1 %524 }
 0xcf1   :  { %v527_v24 = vadd.f32 %v525_v23, %v517_v21 }
 0xcf3   :  { %1275 = vtanh.f32 %v527_v24 }
 0xcfd   :  { %v1276_v25 = vpop.eup %1275 }
 0xcfe   :  { %530 = vrot.lane.b32.xlu0 %v1276_v25, %s1344_s1 }
 0xd70   :  { %v531_v26 = vpop.permute.xlu0 %530 }
 0xd71   :  { %v1479_v27 = vmul.f32 %v531_v26, %v516_v18 }
 0xd73   :  { %536 = vrot.lane.b32.xlu1 %v1479_v27, %s1344_s1 }
 0xde5   :  { %v537_v28 = vpop.permute.xlu1 %536 }
 0xde6   :  { %1173 = vmatmul.mubr.msk.f32.vlgmr.msra.gmra.mrb[4].mxu1 %vm51_vm1, %v537_v28 }
 0xde7   :  { %1241 = vmatpush3.bf16.msra.mxu1 %v1402_v5  ;;  %1194 = vmatprep.mubr.msk.f32.mxu1 %vm1342_vm0, %v1343_v1 }
 0xde8   :  { %1242 = vmatprep.subr.bf16.mxu1 %v1341_v0 }
 0xdeb   :  { %1244 = vmatpush3.bf16.msra.mxu1 %v1405_v7 }
 0xeb9   :  { %v606_v30 = vpop.f32.mrb[4].mxu1 }
 0xeba   :  { %v610_v31 = vadd.f32 %v606_v30, %v534_v29  ;;  %v1174_v32 = vpop.f32.mrb[5].mxu1 }
 0xebc   :  { %1277 = vtanh.f32 %v610_v31  ;;  %v900_v31 = vlaneseq }
 0xec6   :  { %v1278_v33 = vpop.eup %1277 }
 0xec7   :  { %616 = vrot.lane.b32.xlu0 %v1278_v33, %s1344_s1  ;;  %v612_v34 = vmul.f32 0.5, %v1278_v33  ;;  %v1529_v33 = vshrl.u32 %v900_v31, 7 }
 0xec9   :  { %v613_v35 = vadd.f32 0.5, %v612_v34  ;;  %v909_v34 = vsub.s32 1, %v1529_v33 }
 0xecb   :  { %v614_v5 = vmul.f32 %v613_v35, %v527_v24 }
 0xf39   :  { %v617_v36 = vpop.permute.xlu0 %616 }
 0xf3a   :  { %v619_v37 = vmul.f32 %v617_v36, %v613_v35 }
 0xf3c   :  { %621 = vrot.lane.b32.xlu1 %v619_v37, %s1345_s14  ;;  %v930_v37 = vsub.s32 4, %v1529_v33 }
 0xfae   :  { %v622_v1 = vpop.permute.xlu1 %621 }
 0xfaf   :  { %v624_v39 = vadd.f32 %v622_v1, %v614_v5  ;;  %v1346_v5 = vmov 0  }
 0xfb0   :  { %1256 = vset.pattern.permute.xlu1 %v1346_v5  ;;  %1255 = vset.pattern.permute.xlu0 %v1346_v5 }
 0xfb1   :  { %1279 = vtanh.f32 %v624_v39 }
 0xfbb   :  { %v1280_v0 = vpop.eup %1279 }
 0xfbc   :  { %627 = vrot.lane.b32.xlu0 %v1280_v0, %s1344_s1 }
0x102e   :  { %v628_v7 = vpop.permute.xlu0 %627 }
0x102f   :  { %v1492_v40 = vmul.f32 %v628_v7, %v613_v35  ;;  %v898_v35 = vld [vmem:[%s1553_s3] sm:$0xff] }
0x1030   :  { %v910_v36 = vrot.slane %v898_v35, %v909_v34  ;;  %v931_v1 = vrot.slane %v898_v35, %v930_v37 }
0x1031   :  { %633 = vrot.lane.b32.xlu1 %v1492_v40, %s1344_s1 }
0x10a3   :  { %v634_v41 = vpop.permute.xlu1 %633 }
0x10a4   :  { %1184 = vmatmul.mubr.msk.f32.vlgmr.msra.gmra.mrb[6].mxu0 %vm51_vm1, %v634_v41  ;;  %v902_v41 = vsub.s32 0, %v1529_v33 }
0x1177   :  { %v703_v43 = vpop.f32.mrb[6].mxu0 }
0x1178   :  { %v707_v44 = vadd.f32 %v703_v43, %v631_v42  ;;  %v1185_v45 = vpop.f32.mrb[7].mxu0  ;;  %v903_v42 = vrot.slane %v898_v35, %v902_v41  ;;  %v916_v43 = vsub.s32 2, %v1529_v33 }
0x1179   :  { %v923_v45 = vsub.s32 3, %v1529_v33 }
0x117a   :  { %1281 = vtanh.f32 %v707_v44  ;;  %v917_v44 = vrot.slane %v898_v35, %v916_v43 }
0x1184   :  { %v1282_v46 = vpop.eup %1281 }
0x1185   :  { %713 = vrot.lane.b32.xlu0 %v1282_v46, %s1344_s1  ;;  %v709_v47 = vmul.f32 0.5, %v1282_v46  ;;  %v924_v46 = vrot.slane %v898_v35, %v923_v45 }
0x1187   :  { %v710_v48 = vadd.f32 0.5, %v709_v47  ;;  %v937_v47 = vsub.s32 5, %v1529_v33 }
0x1189   :  { %v711_v51 = vmul.f32 %v710_v48, %v624_v39 }
0x11f7   :  { %v714_v49 = vpop.permute.xlu0 %713 }
0x11f8   :  { %v716_v50 = vmul.f32 %v714_v49, %v710_v48  ;;  %v951_v49 = vsub.s32 7, %v1529_v33 }
0x11fa   :  { %718 = vrot.lane.b32.xlu1 %v716_v50, %s1345_s14  ;;  %v952_v50 = vrot.slane %v898_v35, %v951_v49 }
0x126c   :  { %v719_v52 = vpop.permute.xlu1 %718 }
0x126d   :  { %v721_v53 = vadd.f32 %v719_v52, %v711_v51 }
0x126f   :  { %1283 = vtanh.f32 %v721_v53 }
0x1279   :  { %v1284_v55 = vpop.eup %1283 }
0x127a   :  { %724 = vrot.lane.b32.xlu0 %v1284_v55, %s1344_s1 }
0x12ec   :  { %v725_v56 = vpop.permute.xlu0 %724 }
0x12ed   :  { %v727_v57 = vmul.f32 %v725_v56, %v710_v48  ;;  %v938_v48 = vrot.slane %v898_v35, %v937_v47 }
0x12ef   :  { %730 = vrot.lane.b32.xlu1 %v727_v57, %s1344_s1 }
0x1361   :  { %v731_v58 = vpop.permute.xlu1 %730 }
0x1362   :  { %1195 = vmatmul.mubr.msk.f32.vlgmr.msra.gmra.mrb[6].mxu1 %vm51_vm1, %v731_v58 }
0x1435   :  { %v800_v60 = vpop.f32.mrb[6].mxu1 }
0x1436   :  { %v804_v61 = vadd.f32 %v800_v60, %v728_v59  ;;  %v1196_v62 = vpop.f32.mrb[7].mxu1 }
0x1438   :  { %1285 = vtanh.f32 %v804_v61  ;;  %v944_v61 = vsub.s32 6, %v1529_v33 }
0x143a   :  { %v945_v62 = vrot.slane %v898_v35, %v944_v61 }
0x1442   :  { %v1286_v63 = vpop.eup %1285 }
0x1443   :  { %810 = vrot.lane.b32.xlu0 %v1286_v63, %s1344_s1  ;;  %v806_v3 = vmul.f32 0.5, %v1286_v63 }
0x1445   :  { %v807_v4 = vadd.f32 0.5, %v806_v3 }
0x1447   :  { %830 = vrot.lane.b32.xlu0 %v1068_v2, %s1344_s1  ;;  %v808_v15 = vmul.f32 %v807_v4, %v721_v53 }
0x14b5   :  { %v811_v6 = vpop.permute.xlu0 %810 }
0x14b6   :  { %v813_v8 = vmul.f32 %v811_v6, %v807_v4 }
0x14b8   :  { %815 = vrot.lane.b32.xlu1 %v813_v8, %s1345_s14 }
0x14b9   :  { %v831_v9 = vpop.permute.xlu0 %830 }
0x14ba   :  { %v833_v11 = vmul.f32 %v831_v9, %v1424_v22  ;;  %v835_v12 = vmul.f32 %v831_v9, %v1452_v54  ;;  %v837_v13 = vmul.f32 %v831_v9, %v1479_v27  ;;  %v839_v14 = vmul.f32 %v831_v9, %v727_v57 }
0x14bb   :  { %v834_v21 = vmul.f32 %v831_v9, %v1438_v38  ;;  %v836_v23 = vmul.f32 %v831_v9, %v1466_v10  ;;  %v838_v24 = vmul.f32 %v831_v9, %v1492_v40 }
0x14bc   :  { %849 = vrot.lane.b32.xlu0 %v833_v11, %s1344_s1 }
0x14c0   :  { %853 = vrot.lane.b32.xlu0 %v835_v12, %s1344_s1 }
0x14c4   :  { %857 = vrot.lane.b32.xlu0 %v837_v13, %s1344_s1 }
0x14c8   :  { %861 = vrot.lane.b32.xlu0 %v839_v14, %s1344_s1 }
0x152a   :  { %v816_v16 = vpop.permute.xlu1 %815 }
0x152b   :  { %v818_v17 = vadd.f32 %v816_v16, %v808_v15 }
0x152d   :  { %1287 = vtanh.f32 %v818_v17 }
0x152e   :  { %v850_v18 = vpop.permute.xlu0 %849 }
0x152f   :  { %v874_v22 = vsel %vm873_vm2, %v850_v18, 0.0 }
0x1530   :  { %875 = vadd.xlane.f32.xlu0 %v874_v22 }
0x1532   :  { %v854_v19 = vpop.permute.xlu0 %853 }
0x1533   :  { %v880_v54 = vsel %vm873_vm2, %v854_v19, 0.0 }
0x1534   :  { %881 = vadd.xlane.f32.xlu0 %v880_v54 }
0x1536   :  { %v858_v39 = vpop.permute.xlu0 %857 }
0x1537   :  { %v1288_v20 = vpop.eup %1287  ;;  %v886_v0 = vsel %vm873_vm2, %v858_v39, 0.0 }
0x1538   :  { %821 = vrot.lane.b32.xlu1 %v1288_v20, %s1344_s1 }
0x153a   :  { %v862_v7 = vpop.permute.xlu0 %861 }
0x153b   :  { %v892_v40 = vsel %vm873_vm2, %v862_v7, 0.0 }
0x153c   :  { %851 = vrot.lane.b32.xlu1 %v834_v21, %s1344_s1  ;;  %v1005_v21 = vand.u32 127, %v900_v31 }
0x1540   :  { %855 = vrot.lane.b32.xlu1 %v836_v23, %s1344_s1 }
0x1544   :  { %859 = vrot.lane.b32.xlu1 %v838_v24, %s1344_s1 }
0x15aa   :  { %v822_v25 = vpop.permute.xlu1 %821 }
0x15ab   :  { %v824_v10 = vmul.f32 %v822_v25, %v807_v4  ;;  %v1008_v25 = vsub.s32 %v1005_v21, %v1529_v33 }
0x15ad   :  { %v840_v32 = vmul.f32 %v831_v9, %v824_v10 }
0x15ae   :  { %v852_v26 = vpop.permute.xlu1 %851 }
0x15af   :  { %v877_v27 = vsel %vm873_vm2, %v852_v26, 0.0 }
0x15b0   :  { %878 = vadd.xlane.f32.xlu1 %v877_v27 }
0x15b2   :  { %v856_v28 = vpop.permute.xlu1 %855 }
0x15b3   :  { %v883_v29 = vsel %vm873_vm2, %v856_v28, 0.0 }
0x15b4   :  { %884 = vadd.xlane.f32.xlu0 %v883_v29 }
0x15b6   :  { %v860_v38 = vpop.permute.xlu1 %859 }
0x15b7   :  { %v889_v30 = vsel %vm873_vm2, %v860_v38, 0.0 }
0x15b8   :  { %890 = vadd.xlane.f32.xlu0 %v889_v30 }
0x15bd   :  { %v876_v51 = vpop.xlane.xlu0 %875 }
0x15c1   :  { %863 = vrot.lane.b32.xlu1 %v840_v32, %s1344_s1  ;;  %v882_v52 = vpop.xlane.xlu0 %881 }
0x15ce   :  { %912 = vbcast.lane.b32.xlu0 %v910_v36, 256 }
0x15d2   :  { %933 = vbcast.lane.b32.xlu0 %v931_v1, 256 }
0x15e5   :  { %887 = vadd.xlane.f32.xlu1 %v886_v0 }
0x15e9   :  { %893 = vadd.xlane.f32.xlu1 %v892_v40 }
0x15fa   :  { %905 = vbcast.lane.b32.xlu1 %v903_v42, 256 }
0x15fe   :  { %919 = vbcast.lane.b32.xlu1 %v917_v44, 256 }
0x1602   :  { %926 = vbcast.lane.b32.xlu1 %v924_v46, 256 }
0x1606   :  { %940 = vbcast.lane.b32.xlu1 %v938_v48, 256 }
0x160a   :  { %954 = vbcast.lane.b32.xlu1 %v952_v50, 256 }
0x163d   :  { %v879_v53 = vpop.xlane.xlu1 %878 }
0x1641   :  { %v885_v55 = vpop.xlane.xlu0 %884  ;;  %v864_v56 = vpop.permute.xlu1 %863 }
0x1642   :  { %v895_v57 = vsel %vm873_vm2, %v864_v56, 0.0 }
0x1643   :  { %896 = vadd.xlane.f32.xlu0 %v895_v57 }
0x1645   :  { %v891_v58 = vpop.xlane.xlu0 %890 }
0x1649   :  { %v913_v59 = vpop.permute.xlu0 %912 }
0x164a   :  { %v965_v60 = vadd.f32 %v913_v59, %v879_v53 }
0x164c   :  { %984 = vperm.xlu1 %1256, %v965_v60  }
0x164d   :  { %v934_v9 = vpop.permute.xlu0 %933 }
0x1659   :  { %947 = vbcast.lane.b32.xlu0 %v945_v62, 256 }
0x1672   :  { %v888_v63 = vpop.xlane.xlu1 %887 }
0x1673   :  { %v968_v12 = vadd.f32 %v934_v9, %v888_v63 }
0x1676   :  { %v894_v2 = vpop.xlane.xlu1 %893 }
0x167a   :  { %v906_v3 = vpop.permute.xlu1 %905 }
0x167b   :  { %v964_v4 = vadd.f32 %v906_v3, %v876_v51 }
0x167d   :  { %981 = vperm.xlu0 %1255, %v964_v4  }
0x167e   :  { %v920_v6 = vpop.permute.xlu1 %919 }
0x167f   :  { %v966_v8 = vadd.f32 %v920_v6, %v882_v52 }
0x1681   :  { %987 = vperm.xlu1 %1256, %v966_v8  }
0x1682   :  { %v927_v11 = vpop.permute.xlu1 %926 }
0x1683   :  { %v967_v13 = vadd.f32 %v927_v11, %v885_v55 }
0x1685   :  { %993 = vperm.xlu1 %1256, %v968_v12   ;;  %990 = vperm.xlu0 %1255, %v967_v13  }
0x1686   :  { %v941_v14 = vpop.permute.xlu1 %940 }
0x1687   :  { %v969_v15 = vadd.f32 %v941_v14, %v891_v58 }
0x1689   :  { %996 = vperm.xlu0 %1255, %v969_v15  }
0x168a   :  { %v955_v16 = vpop.permute.xlu1 %954 }
0x16cb   :  { %v985_v54 = vpop.permute.xlu1 %984 }
0x16cc   :  { %v1013_v28 = vrot.slane %v985_v54, %v1008_v25 }
0x16d0   :  { %v897_v17 = vpop.xlane.xlu0 %896 }
0x16d1   :  { %v971_v18 = vadd.f32 %v955_v16, %v897_v17 }
0x16d3   :  { %1002 = vperm.xlu0 %1255, %v971_v18  }
0x16d4   :  { %v948_v22 = vpop.permute.xlu0 %947 }
0x16d5   :  { %v970_v19 = vadd.f32 %v948_v22, %v894_v2 }
0x16d7   :  { %999 = vperm.xlu1 %1256, %v970_v19  }
0x16fc   :  { %v982_v20 = vpop.permute.xlu0 %981 }
0x16fd   :  { %v1009_v26 = vrot.slane %v982_v20, %v1008_v25 }
0x16ff   :  { %v1039_v10 = vsel %vm1038_vm3, %v1013_v28, %v1009_v26 }
0x1700   :  { %v988_v23 = vpop.permute.xlu1 %987 }
0x1701   :  { %v1017_v27 = vrot.slane %v988_v23, %v1008_v25 }
0x1703   :  { %v1041_v32 = vsel %vm1040_vm4, %v1017_v27, %v1039_v10 }
0x1704   :  { %v991_v24 = vpop.permute.xlu0 %990  ;;  %v994_v38 = vpop.permute.xlu1 %993 }
0x1705   :  { %v1021_v29 = vrot.slane %v991_v24, %v1008_v25  ;;  %v1025_v34 = vrot.slane %v994_v38, %v1008_v25 }
0x1707   :  { %v1043_v35 = vsel %vm1042_vm5, %v1021_v29, %v1041_v32 }
0x1708   :  { %v997_v30 = vpop.permute.xlu0 %996  ;;  %v1045_v33 = vsel %vm1044_vm6, %v1025_v34, %v1043_v35 }
0x1709   :  { %v1029_v36 = vrot.slane %v997_v30, %v1008_v25 }
0x170b   :  { %v1047_v1 = vsel %vm1046_vm7, %v1029_v36, %v1045_v33 }
0x1752   :  { %v1003_v31 = vpop.permute.xlu0 %1002 }
0x1753   :  { %v1037_v39 = vrot.slane %v1003_v31, %v1008_v25 }
0x1756   :  { %v1000_v37 = vpop.permute.xlu1 %999 }
0x1757   :  { %v1033_v5 = vrot.slane %v1000_v37, %v1008_v25 }
0x1759   :  { %v1049_v0 = vsel %vm1048_vm8, %v1033_v5, %v1047_v1 }
0x175a   :  { %v1051_v7 = vsel %vm1050_vm9, %v1037_v39, %v1049_v0 }
0x175b   :  { %1054 = vst.msk [vmem:[%s1554_s4] sm:$0xff] %vm1053_vm10, %v1051_v7 }
0x175c   :  { %1059 = vsyncpa [#allocation3], 1 }
0x175d   :  { %1060 = vsyncpa [#allocation5], 1 }

</bundles_post_ra>
